<compile_context>
chip_gen: v6e
topology: v6e:2x2x1
jax: 0.10.0
libtpu: 0.0.40
codegen_flags: <defaults>
</compile_context>

<pallas_src>
import functools

import jax
import jax.numpy as jnp
import numpy as np
from jax.experimental import pallas as pl
from jax.experimental.pallas import tpu as pltpu

LANE = 128  # TPU lane width; hidden/head dims are zero-padded to this.


def _round_up(x, m):
    return ((x + m - 1) // m) * m


def _cdiv(a, b):
    return -(-a // b)


def actor_kernel(obs_ref, w_ref, b_ref, out_ref, *, obs_dim):
    """One batch tile of the Actor forward (up to the exp on log_sigma).

    obs_ref: [TILE_B, obs_dim] f32   raw observations (no lane padding)
    w_ref:   [3, 128, 128]     bf16  layer 0 = fc1, 1 = fc2, 2 = fused fc3|fc4
    b_ref:   [3, 128]          f32   biases packed the same way
    out_ref: [TILE_B, 128]     f32   lanes [0,act) = mu, [act,2*act) = log_sigma
    """
    x = obs_ref[...].astype(jnp.bfloat16)            # bf16 MXU operand
    w1 = w_ref[0, :obs_dim, :]                       # [obs_dim, 128] bf16 slice

    # fc1 + tanh (f32 accumulate, f32 elementwise)
    h1 = jnp.tanh(
        jnp.dot(x, w1, preferred_element_type=jnp.float32) + b_ref[0:1, :]
    )
    # fc2 + tanh
    h2 = jnp.tanh(
        jnp.dot(h1.astype(jnp.bfloat16), w_ref[1],
                preferred_element_type=jnp.float32) + b_ref[1:2, :]
    )
    # fused head: one MXU push for both fc3 (mu) and fc4 (log_sigma)
    head = jnp.dot(h2.astype(jnp.bfloat16), w_ref[2],
                   preferred_element_type=jnp.float32) + b_ref[2:3, :]

    out_ref[...] = head.astype(out_ref.dtype)        # lane-dense unmasked store


def actor_forward(obs, params, *, tile_b_max=1024):
    """obs: [B, obs_dim].  params: dict produced by init_actor_params."""
    w_all = params["w_all"]          # [3, 128, 128] bf16
    b_all = params["b_all"]          # [3, 128]      f32
    obs_dim = params["obs_dim"]
    act_dim = params["act_dim"]

    obs = obs.astype(jnp.float32)
    B = obs.shape[0]

    # Batch tiling: tile ~= cdiv(B, num_tiles) rounded to the 8-row sublane,
    # which (a) amortizes the ~0.35us/step grid overhead with big tiles,
    # (b) bounds padding waste, and (c) keeps >=2 grid steps when B >= 16 so
    # v7x's two TensorCores both get a share of the (parallel) batch axis.
    b8 = _round_up(max(B, 8), 8)
    num_tiles = _cdiv(b8, min(tile_b_max, b8))
    if num_tiles == 1 and b8 >= 16:
        num_tiles = 2
    tile_b = _round_up(_cdiv(b8, num_tiles), 8)
    b_pad = tile_b * num_tiles

    # Only the batch axis is padded (cheap: B x obs_dim, not B x 128).
    obs_p = obs if b_pad == B else jnp.pad(obs, ((0, b_pad - B), (0, 0)))

    kernel = functools.partial(actor_kernel, obs_dim=obs_dim)

    cost = pl.CostEstimate(
        flops=2 * b_pad * (obs_dim + 2 * LANE) * LANE,
        transcendentals=2 * b_pad * LANE,                       # tanh, tanh
        bytes_accessed=(obs_p.size * 4 + w_all.size * 2
                        + b_all.size * 4 + b_pad * LANE * 4),
    )

    head = pl.pallas_call(
        kernel,
        out_shape=jax.ShapeDtypeStruct((b_pad, LANE), jnp.float32),
        grid=(num_tiles,),
        in_specs=[
            # obs tile: last block dim == full array dim (legal, no 128 pad)
            pl.BlockSpec((tile_b, obs_dim), lambda i: (i, 0)),
            pl.BlockSpec((3, LANE, LANE), lambda i: (0, 0, 0)),  # weights (resident)
            pl.BlockSpec((3, LANE), lambda i: (0, 0)),           # biases (resident)
        ],
        out_specs=pl.BlockSpec((tile_b, LANE), lambda i: (i, 0)),
        compiler_params=pltpu.CompilerParams(
            dimension_semantics=("parallel",),  # v7x: shard batch over both TCs
        ),
        cost_estimate=cost,
    )(obs_p, w_all, b_all)

    mu = head[:B, :act_dim]
    # exp only on the act_dim real sigma lanes, outside the kernel
    # (frees the EUP from 128-wide exp + the VPU from iota/where per tile).
    sigma = jnp.exp(head[:B, act_dim:2 * act_dim])
    return mu, sigma


def init_actor_params(key, obs_dim, act_dim, hidden1, hidden2):
    """PyTorch-style init (uniform +-1/sqrt(fan_in)), packed for the kernel.

    w_all [3, 128, 128] bf16: layer 0 = fc1, 1 = fc2, 2 = fused fc3|fc4 head
      (mu weights in cols [0, act), log_sigma weights in cols [act, 2*act)).
    b_all [3, 128] f32: biases packed the same way. Everything else zero-padded.
    Unpadded f32 per-layer copies are kept for the pure-JAX reference.
    """
    assert max(hidden1, hidden2, 2 * act_dim) <= LANE, \
        "feature dims must fit in one 128-lane slab"
    assert obs_dim <= LANE and obs_dim % 8 == 0, \
        "obs_dim should be a multiple of 8 and <= 128 for the in-kernel K slice"

    def linear(k, fan_in, fan_out):
        kw, kb = jax.random.split(k)
        bound = 1.0 / np.sqrt(fan_in)
        w = jax.random.uniform(kw, (fan_in, fan_out), jnp.float32, -bound, bound)
        b = jax.random.uniform(kb, (fan_out,), jnp.float32, -bound, bound)
        return w, b

    k1, k2, k3, k4 = jax.random.split(key, 4)
    w1, b1 = linear(k1, obs_dim, hidden1)
    w2, b2 = linear(k2, hidden1, hidden2)
    w3, b3 = linear(k3, hidden2, act_dim)
    w4, b4 = linear(k4, hidden2, act_dim)

    w34 = jnp.concatenate([w3, w4], axis=1)   # [hidden2, 2*act_dim]
    b34 = jnp.concatenate([b3, b4], axis=0)   # [2*act_dim]

    def pad_w(w):
        return jnp.zeros((LANE, LANE), jnp.float32).at[:w.shape[0], :w.shape[1]].set(w)

    def pad_b(b):
        return jnp.zeros((LANE,), jnp.float32).at[:b.shape[0]].set(b)

    return {
        "w_all": jnp.stack([pad_w(w1), pad_w(w2), pad_w(w34)], axis=0)
                    .astype(jnp.bfloat16),                       # bf16 MXU operands
        "b_all": jnp.stack([pad_b(b1), pad_b(b2), pad_b(b34)], axis=0),  # f32
        "obs_dim": obs_dim,
        "act_dim": act_dim,
        # unpadded f32 copies for the reference implementation
        "w1": w1, "b1": b1, "w2": w2, "b2": b2,
        "w3": w3, "b3": b3, "w4": w4, "b4": b4,
    }


def actor_forward_ref(obs, p):
    """Pure-JAX f32 reference (matches the PyTorch module exactly)."""
    h1 = jnp.tanh(obs @ p["w1"] + p["b1"])
    h2 = jnp.tanh(h1 @ p["w2"] + p["b2"])
    mu = h2 @ p["w3"] + p["b3"]
    sigma = jnp.exp(h2 @ p["w4"] + p["b4"])
    return mu, sigma
    # TODO(synk): Actor.log_prob (Normal/Independent log-density) is a separate
    # method, not part of forward(); compute host-side from (mu, sigma) if needed.


if __name__ == "__main__":
    # Small shapes consistent with Actor(obs_dim, act_dim, hidden1, hidden2).
    batch, obs_dim, act_dim, hidden1, hidden2 = 8, 16, 8, 32, 32

    key = jax.random.PRNGKey(0)
    k_obs, k_obs2, k_params = jax.random.split(key, 3)

    params = init_actor_params(k_params, obs_dim, act_dim, hidden1, hidden2)

    # bf16 matmul operands (f32 accumulate) => looser tolerances than pure f32.
    RTOL, ATOL = 3e-2, 2e-2

    # Case 1: tiny batch (single 8-row tile).
    obs = jax.random.normal(k_obs, (batch, obs_dim), dtype=jnp.float32)
    mu, sigma = actor_forward(obs, params)
    jax.block_until_ready((mu, sigma))
    mu_ref, sigma_ref = actor_forward_ref(obs, params)
    np.testing.assert_allclose(np.asarray(mu), np.asarray(mu_ref), rtol=RTOL, atol=ATOL)
    np.testing.assert_allclose(np.asarray(sigma), np.asarray(sigma_ref), rtol=RTOL, atol=ATOL)

    # Case 2: larger ragged batch (exercises multi-tile grid + batch padding).
    big_b = 1000
    obs2 = jax.random.normal(k_obs2, (big_b, obs_dim), dtype=jnp.float32)
    mu2, sigma2 = actor_forward(obs2, params)
    jax.block_until_ready((mu2, sigma2))
    mu2_ref, sigma2_ref = actor_forward_ref(obs2, params)
    np.testing.assert_allclose(np.asarray(mu2), np.asarray(mu2_ref), rtol=RTOL, atol=ATOL)
    np.testing.assert_allclose(np.asarray(sigma2), np.asarray(sigma2_ref), rtol=RTOL, atol=ATOL)

    print("KERNEL_OK")
</pallas_src>

<mosaic_0001>
module attributes {stable_mosaic.version = 11 : i64} {
  func.func @actor_kernel(%arg0: i32, %arg1: memref<8x16xf32, #tpu.memory_space<vmem>>, %arg2: memref<3x128x128xbf16, #tpu.memory_space<vmem>>, %arg3: memref<3x128xf32, #tpu.memory_space<vmem>>, %arg4: memref<8x128xf32, #tpu.memory_space<vmem>>) attributes {dimension_semantics = [#tpu.dimension_semantics<parallel>], iteration_bounds = array<i64: 1>, scalar_prefetch = 0 : i64, scratch_operands = 0 : i64, tpu.core_type = #tpu.core_type<tc>, window_params = [{transform_indices = @transform_0, window_bounds = array<i64: 8, 16>}, {pipeline_mode = #tpu.pipeline_mode<synchronous>, transform_indices = @transform_1, window_bounds = array<i64: 3, 128, 128>}, {pipeline_mode = #tpu.pipeline_mode<synchronous>, transform_indices = @transform_2, window_bounds = array<i64: 3, 128>}, {transform_indices = @transform_3, window_bounds = array<i64: 8, 128>}]} {
    %c0 = arith.constant 0 : index
    %c0_0 = arith.constant 0 : index
    %0 = vector.load %arg1[%c0, %c0_0] : memref<8x16xf32, #tpu.memory_space<vmem>>, vector<8x16xf32>
    %1 = arith.truncf %0 : vector<8x16xf32> to vector<8x16xbf16>
    %c0_1 = arith.constant 0 : index
    %c0_2 = arith.constant 0 : index
    %c0_3 = arith.constant 0 : index
    %2 = vector.load %arg2[%c0_1, %c0_2, %c0_3] : memref<3x128x128xbf16, #tpu.memory_space<vmem>>, vector<1x16x128xbf16>
    %3 = vector.shape_cast %2 : vector<1x16x128xbf16> to vector<16x128xbf16>
    %cst = arith.constant dense<0.000000e+00> : vector<8x128xf32>
    %4 = tpu.matmul %1, %3, %cst {dimension_numbers = #tpu.dot_dimension_numbers<[1], [0], [0], [1], [0, 0, 1, 1], [], []>} : vector<8x16xbf16>, vector<16x128xbf16>, vector<8x128xf32> -> vector<8x128xf32>
    %c0_4 = arith.constant 0 : index
    %c0_5 = arith.constant 0 : index
    %5 = vector.load %arg3[%c0_4, %c0_5] : memref<3x128xf32, #tpu.memory_space<vmem>>, vector<1x128xf32>
    %6 = vector.broadcast %5 : vector<1x128xf32> to vector<8x128xf32>
    %7 = arith.addf %4, %6 : vector<8x128xf32>
    %8 = math.tanh %7 : vector<8x128xf32>
    %9 = arith.truncf %8 : vector<8x128xf32> to vector<8x128xbf16>
    %c1 = arith.constant 1 : index
    %c0_6 = arith.constant 0 : index
    %c0_7 = arith.constant 0 : index
    %10 = vector.load %arg2[%c1, %c0_6, %c0_7] : memref<3x128x128xbf16, #tpu.memory_space<vmem>>, vector<1x128x128xbf16>
    %11 = vector.shape_cast %10 : vector<1x128x128xbf16> to vector<128x128xbf16>
    %cst_8 = arith.constant dense<0.000000e+00> : vector<8x128xf32>
    %12 = tpu.matmul %9, %11, %cst_8 {dimension_numbers = #tpu.dot_dimension_numbers<[1], [0], [0], [1], [0, 0, 1, 1], [], []>} : vector<8x128xbf16>, vector<128x128xbf16>, vector<8x128xf32> -> vector<8x128xf32>
    %c1_9 = arith.constant 1 : index
    %c0_10 = arith.constant 0 : index
    %13 = vector.load %arg3[%c1_9, %c0_10] : memref<3x128xf32, #tpu.memory_space<vmem>>, vector<1x128xf32>
    %14 = vector.broadcast %13 : vector<1x128xf32> to vector<8x128xf32>
    %15 = arith.addf %12, %14 : vector<8x128xf32>
    %16 = math.tanh %15 : vector<8x128xf32>
    %17 = arith.truncf %16 : vector<8x128xf32> to vector<8x128xbf16>
    %c2 = arith.constant 2 : index
    %c0_11 = arith.constant 0 : index
    %c0_12 = arith.constant 0 : index
    %18 = vector.load %arg2[%c2, %c0_11, %c0_12] : memref<3x128x128xbf16, #tpu.memory_space<vmem>>, vector<1x128x128xbf16>
    %19 = vector.shape_cast %18 : vector<1x128x128xbf16> to vector<128x128xbf16>
    %cst_13 = arith.constant dense<0.000000e+00> : vector<8x128xf32>
    %20 = tpu.matmul %17, %19, %cst_13 {dimension_numbers = #tpu.dot_dimension_numbers<[1], [0], [0], [1], [0, 0, 1, 1], [], []>} : vector<8x128xbf16>, vector<128x128xbf16>, vector<8x128xf32> -> vector<8x128xf32>
    %c2_14 = arith.constant 2 : index
    %c0_15 = arith.constant 0 : index
    %21 = vector.load %arg3[%c2_14, %c0_15] : memref<3x128xf32, #tpu.memory_space<vmem>>, vector<1x128xf32>
    %22 = vector.broadcast %21 : vector<1x128xf32> to vector<8x128xf32>
    %23 = arith.addf %20, %22 : vector<8x128xf32>
    %c0_16 = arith.constant 0 : index
    %c0_17 = arith.constant 0 : index
    %24 = vector.load %arg4[%c0_16, %c0_17] : memref<8x128xf32, #tpu.memory_space<vmem>>, vector<8x128xf32>
    tpu.vector_store %arg4[%c0_16, %c0_17], %23 {strides = array<i32>} : memref<8x128xf32, #tpu.memory_space<vmem>>, vector<8x128xf32>,
    return
  }
  func.func @transform_0(%arg0: i32) -> (i32, i32) {
    %c0_i32 = arith.constant 0 : i32
    %c0_i32_0 = arith.constant 0 : i32
    return %arg0, %c0_i32 : i32, i32
  }
  func.func @transform_1(%arg0: i32) -> (i32, i32, i32) {
    %c0_i32 = arith.constant 0 : i32
    %c0_i32_0 = arith.constant 0 : i32
    %c0_i32_1 = arith.constant 0 : i32
    %c0_i32_2 = arith.constant 0 : i32
    return %c0_i32, %c0_i32_0, %c0_i32_1 : i32, i32, i32
  }
  func.func @transform_2(%arg0: i32) -> (i32, i32) {
    %c0_i32 = arith.constant 0 : i32
    %c0_i32_0 = arith.constant 0 : i32
    %c0_i32_1 = arith.constant 0 : i32
    return %c0_i32, %c0_i32_0 : i32, i32
  }
  func.func @transform_3(%arg0: i32) -> (i32, i32) {
    %c0_i32 = arith.constant 0 : i32
    %c0_i32_0 = arith.constant 0 : i32
    return %arg0, %c0_i32 : i32, i32
  }
}

</mosaic_0001>

<bundles_post_ra>
// kernel: tpu_custom_call.1
= control target key start
LH: loop header
LB: loop body
LE: loop exit
PB: predicated region body
PF: predicated region fallthrough
CT: control target
= control target key end

     0   :  { %8 = vsyncpa [#allocation3], 0  ;;  %s618_s0 = inlined_call_operand.hbm [shape: f32[8,16], index: 0, kind: input, shape index: {}]   ;;  %s619_s1 = inlined_call_operand.hbm [shape: bf16[3,128,128], index: 1, kind: input, shape index: {}]   ;;  %s620_s2 = inlined_call_operand.hbm [shape: f32[3,128], index: 2, kind: input, shape index: {}]   ;;  %s621_s3 = inlined_call_operand.hbm [shape: f32[8,128], index: 3, kind: output, shape index: {}]  }
   0x1   :  { %9 = vsyncpa [#allocation6], 0 }
   0x2   :  { %10 = vsyncpa [#allocation4], 0  ;;  %s555_s12 = smov [#allocation5]  }
   0x3   :  { %s26_s13 = sshll.u32 %s555_s12, 4  ;;  %s27_s13 = int_to_ptr.vmem [resolvable:$true] %s26_s13 }
   0x4   :  { %s477_s14 = scalar_lea.vmem %s27_s13, 3072  ;;  %p482_p1 = scmp.lt.s32.totalorder %s27_s13, %s27_s13 }
   0x5   :  { %p478_p0 = scmp.ne.s32.totalorder %s27_s13, %s477_s14  ;;  %p483_p2 = scmp.lt.s32.totalorder %s477_s14, %s477_s14 }
   0x7   :  { %p484_p3 = por %p483_p2, %p482_p1 }
   0x9   :  { %p485_p4 = pnand %p484_p3, %p478_p0 }
   0xb   :  { %488 = shalt.err (!%p485_p4)
}
   0xc   :  { %s556_s15 = smov 64   ;;  %s557_s16 = smov 4  }
   0xd   :  { %32 = dma.hbm_to_vmem [thread:$0]  %s619_s1, 3072, %s27_s13, [#allocation6], %s556_s15, %s556_s15, %s557_s16  }
   0xe   :  { %s558_s19 = smov [#allocation2]   ;;  %s559_s21 = smov [#allocation7]  }
   0xf   :  { %s17_s20 = sshll.u32 %s558_s19, 4  ;;  %s39_s22 = sshll.u32 %s559_s21, 4  ;;  %s18_s20 = int_to_ptr.vmem [resolvable:$true] %s17_s20  ;;  %s40_s22 = int_to_ptr.vmem [resolvable:$true] %s39_s22 }
  0x10   :  { %s497_s23 = scalar_lea.vmem %s18_s20, 128  ;;  %p502_p6 = scmp.lt.s32.totalorder %s18_s20, %s18_s20 }
  0x11   :  { %p498_p5 = scmp.ne.s32.totalorder %s18_s20, %s497_s23  ;;  %p503_p7 = scmp.lt.s32.totalorder %s497_s23, %s497_s23 }
  0x13   :  { %p504_p8 = por %p503_p7, %p502_p6 }
  0x15   :  { %p505_p9 = pnand %p504_p8, %p498_p5 }
  0x17   :  { %508 = shalt.err (!%p505_p9)
}
  0x18   :  { %20 = dma.hbm_to_vmem [thread:$0]  %s618_s0, 128, %s18_s20, [#allocation3]  }
  0x19   :  { %s517_s26 = scalar_lea.vmem %s40_s22, 64  ;;  %p522_p11 = scmp.lt.s32.totalorder %s40_s22, %s40_s22 }
  0x1a   :  { %p518_p10 = scmp.ne.s32.totalorder %s40_s22, %s517_s26  ;;  %p523_p12 = scmp.lt.s32.totalorder %s517_s26, %s517_s26 }
  0x1c   :  { %p524_p13 = por %p523_p12, %p522_p11 }
  0x1e   :  { %p525_p0 = pnand %p524_p13, %p518_p10 }
  0x20   :  { %528 = shalt.err (!%p525_p0)
}
  0x21   :  { %42 = dma.hbm_to_vmem [thread:$0]  %s620_s2, 64, %s40_s22, [#allocation6]  }
  0x22   :  { %549 = dma.done.wait [#allocation3], 128  }
  0x23   :  { %550 = vsyncadd [#allocation3], 4294967168 }
  0x24   :  { %551 = dma.done.wait [#allocation6], 3136  }
  0x25   :  { %552 = vsyncadd [#allocation6], 4294964160  ;;  %v560_v0 = vmov 0.0   ;;  %vm561_vm0 = vmmov 0   ;;  %v448_v1 = vld [vmem:[#allocation5] sm:$0xff]   ;;  %v53_v2 = vld [vmem:[#allocation2] sm:$0xff] }
  0x26   :  { %394 = vmatprep.subr.bf16.mxu0 %v560_v0  ;;  %396 = vmatprep.mubr.msk.bf16.mxu0 %vm561_vm0, %v560_v0  ;;  %v54_v3 = vpack.c.bf16 %v53_v2, %v53_v2  ;;  %vm68_vm1 = vcmask 130048   ;;  %v449_v4 = vld [vmem:[#allocation5 + $0x78] sm:$0xff]   ;;  %v450_v5 = vld [vmem:[#allocation5 + $0x70] sm:$0xff]   ;;  %v451_v6 = vld [vmem:[#allocation5 + $0x68] sm:$0xff]   ;;  %s562_s0 = smov [#allocation8]  }
  0x27   :  { %400 = vmatprep.subr.bf16.mxu1 %v560_v0  ;;  %416 = vmatprep.mubr.msk.bf16.mxu1 %vm561_vm0, %v560_v0  ;;  %v452_v7 = vld [vmem:[#allocation5 + $0x60] sm:$0xff]   ;;  %v453_v8 = vld [vmem:[#allocation5 + $0x58] sm:$0xff]   ;;  %v454_v9 = vld [vmem:[#allocation5 + $0x50] sm:$0xff]   ;;  %s343_s2 = sshll.u32 %s562_s0, 4  ;;  %s344_s2 = int_to_ptr.vmem [resolvable:$true] %s343_s2 }
  0x28   :  { %395 = vmatpush3.bf16.msra.mxu0 %v448_v1  ;;  %401 = vmatpush3.bf16.msra.mxu1 %v449_v4  ;;  %v455_v10 = vld [vmem:[#allocation5 + $0x48] sm:$0xff]   ;;  %v456_v11 = vld [vmem:[#allocation5 + $0x40] sm:$0xff]   ;;  %v457_v12 = vld [vmem:[#allocation5 + $0xb8] sm:$0xff]   ;;  %s529_s28 = scalar_lea.vmem %s344_s2, 128  ;;  %p534_p2 = scmp.lt.s32.totalorder %s344_s2, %s344_s2 }
  0x29   :  { %420 = vmatprep.subr.bf16.mxu0 %v560_v0  ;;  %402 = vmatprep.subr.bf16.mxu1 %v560_v0  ;;  %v458_v13 = vld [vmem:[#allocation5 + $0xb0] sm:$0xff]   ;;  %v459_v14 = vld [vmem:[#allocation5 + $0xa8] sm:$0xff]   ;;  %v353_v15 = vld [vmem:[#allocation7] ss:$0 sm:$0xff]  ;;  %p530_p1 = scmp.ne.s32.totalorder %s344_s2, %s529_s28  ;;  %p535_p3 = scmp.lt.s32.totalorder %s529_s28, %s529_s28 }
  0x2a   :  { %v460_v23 = vld [vmem:[#allocation5 + $0xa0] sm:$0xff]   ;;  %v461_v24 = vld [vmem:[#allocation5 + $0x98] sm:$0xff]   ;;  %v462_v25 = vld [vmem:[#allocation5 + $0x90] sm:$0xff]  }
  0x2b   :  { %397 = vmatmul.mubr.msk.bf16.vlgmr.msra.gmra.mxu0 %vm68_vm1, %v54_v3  ;;  %v463_v26 = vld [vmem:[#allocation5 + $0x88] sm:$0xff]   ;;  %v464_v27 = vld [vmem:[#allocation5 + $0x80] sm:$0xff]   ;;  %p536_p4 = por %p535_p3, %p534_p2 }
  0x2c   :  { %436 = vmatprep.mubr.msk.bf16.mxu0 %vm561_vm0, %v560_v0  ;;  %403 = vmatpush3.bf16.msra.mxu1 %v450_v5  ;;  %v356_v28 = vld [vmem:[#allocation7 + $0x1] ss:$0 sm:$0xff]  ;;  %v365_v36 = vld [vmem:[#allocation7 + $0x2] ss:$0 sm:$0xff] }
  0x2d   :  { %404 = vmatprep.subr.bf16.mxu1 %v560_v0  ;;  %421 = vmatpush3.bf16.msra.mxu0 %v457_v12  ;;  %p537_p5 = pnand %p536_p4, %p530_p1 }
  0x2e   :  { %422 = vmatprep.subr.bf16.mxu0 %v560_v0 }
  0x30   :  { %405 = vmatpush3.bf16.msra.mxu1 %v451_v6 }
  0x31   :  { %406 = vmatprep.subr.bf16.mxu1 %v560_v0  ;;  %423 = vmatpush3.bf16.msra.mxu0 %v458_v13 }
  0x32   :  { %424 = vmatprep.subr.bf16.mxu0 %v560_v0 }
  0x34   :  { %407 = vmatpush3.bf16.msra.mxu1 %v452_v7 }
  0x35   :  { %408 = vmatprep.subr.bf16.mxu1 %v560_v0  ;;  %425 = vmatpush3.bf16.msra.mxu0 %v459_v14 }
  0x36   :  { %426 = vmatprep.subr.bf16.mxu0 %v560_v0 }
  0x38   :  { %409 = vmatpush3.bf16.msra.mxu1 %v453_v8 }
  0x39   :  { %410 = vmatprep.subr.bf16.mxu1 %v560_v0  ;;  %427 = vmatpush3.bf16.msra.mxu0 %v460_v23 }
  0x3a   :  { %428 = vmatprep.subr.bf16.mxu0 %v560_v0 }
  0x3c   :  { %411 = vmatpush3.bf16.msra.mxu1 %v454_v9 }
  0x3d   :  { %412 = vmatprep.subr.bf16.mxu1 %v560_v0  ;;  %429 = vmatpush3.bf16.msra.mxu0 %v461_v24 }
  0x3e   :  { %430 = vmatprep.subr.bf16.mxu0 %v560_v0 }
  0x40   :  { %413 = vmatpush3.bf16.msra.mxu1 %v455_v10 }
  0x41   :  { %414 = vmatprep.subr.bf16.mxu1 %v560_v0  ;;  %431 = vmatpush3.bf16.msra.mxu0 %v462_v25 }
  0x42   :  { %432 = vmatprep.subr.bf16.mxu0 %v560_v0 }
  0x44   :  { %415 = vmatpush3.bf16.msra.mxu1 %v456_v11 }
  0x45   :  { %433 = vmatpush3.bf16.msra.mxu0 %v463_v26 }
  0x46   :  { %434 = vmatprep.subr.bf16.mxu0 %v560_v0 }
  0x49   :  { %435 = vmatpush3.bf16.msra.mxu0 %v464_v27 }
  0xeb   :  { %v106_v16 = vpop.f32.mrf.mxu0 }
  0xec   :  { %v107_v17 = vadd.f32 %v353_v15, %v106_v16 }
  0xed   :  { %v398_v18 = vpop.f32.mrf.mxu0 }
  0xee   :  { %465 = vtanh.f32 %v107_v17 }
  0xef   :  { %v109_v19 = vpop.f32.mrf.mxu0 }
  0xf1   :  { %v399_v20 = vpop.f32.mrf.mxu0 }
  0xfb   :  { %v466_v21 = vpop.eup %465 }
  0xfc   :  { %v113_v22 = vpack.c.bf16 %v466_v21, %v466_v21 }
  0xfe   :  { %417 = vmatmul.mubr.bf16.vlgmr.msra.gmra.mxu1 %v113_v22 }
 0x1be   :  { %v218_v29 = vpop.f32.mrf.mxu1 }
 0x1bf   :  { %v219_v30 = vadd.f32 %v356_v28, %v218_v29 }
 0x1c0   :  { %v418_v31 = vpop.f32.mrf.mxu1 }
 0x1c1   :  { %467 = vtanh.f32 %v219_v30 }
 0x1c2   :  { %v221_v32 = vpop.f32.mrf.mxu1 }
 0x1c4   :  { %v419_v33 = vpop.f32.mrf.mxu1 }
 0x1ce   :  { %v468_v34 = vpop.eup %467 }
 0x1cf   :  { %v225_v35 = vpack.c.bf16 %v468_v34, %v468_v34 }
 0x1d1   :  { %437 = vmatmul.mubr.bf16.vlgmr.msra.gmra.mxu0 %v225_v35 }
 0x291   :  { %v330_v37 = vpop.f32.mrf.mxu0 }
 0x292   :  { %v331_v38 = vadd.f32 %v365_v36, %v330_v37 }
 0x293   :  { %v438_v39 = vpop.f32.mrf.mxu0 }
 0x294   :  { %336 = vst [vmem:[#allocation8] sm:$0xff] %v331_v38 }
 0x295   :  { %v333_v40 = vpop.f32.mrf.mxu0 }
 0x296   :  { %540 = shalt.err (!%p537_p5)
}
 0x297   :  { %346 = dma.vmem_to_hbm [thread:$0]  %s344_s2, 128, %s621_s3, [#allocation4]   ;;  %v439_v41 = vpop.f32.mrf.mxu0 }
 0x298   :  { %553 = dma.done.wait [#allocation4], 128  }
 0x299   :  { %554 = vsyncadd [#allocation4], 4294967168 }
 0x29a   :  { %350 = vsyncpa [#allocation3], 1 }
 0x29b   :  { %351 = vsyncpa [#allocation6], 1 }
 0x29c   :  { %352 = vsyncpa [#allocation4], 1 }

</bundles_post_ra>
